<compile_context>
chip_gen: v7x
topology: tpu7x:2x2x1
jax: 0.10.0
libtpu: 0.0.40
codegen_flags: <defaults>
</compile_context>

<pallas_src>
import functools

import jax
import jax.numpy as jnp
from jax import lax
from jax.experimental import pallas as pl
from jax.experimental.pallas import tpu as pltpu


def _pool_kernel(h_ref, sf_ref, o_ref, *, n_nodes, k):
    """Per-invocation body: h (B,N,D), sf (B,1,D) -> out (B,K,D)."""
    h = h_ref[...].astype(jnp.float32)        # (B, N, D)
    sf = sf_ref[...].astype(jnp.float32)      # (B, 1, D)

    # scores[b, n] = sigmoid(<h[b, n, :], sf[b, 0, :]>)
    # One VPU broadcast-multiply + one XLU lane reduce; sigmoid goes to EUP.
    w = jnp.sum(h * sf, axis=2, keepdims=True)            # (B, N, 1)
    scores = jax.nn.sigmoid(w)                             # in (0, 1)

    row_ids = lax.broadcasted_iota(jnp.int32, scores.shape, 1)  # node index

    # Iterative arg-max top-k; ties -> lowest index (matches lax/torch.topk).
    # sigmoid > 0, so -1.0 is a safe finite "already taken" sentinel (no -inf,
    # hence no 0 * -inf NaN risk even if rows were exhausted).
    cur = scores
    for j in range(k):
        m = jnp.max(cur, axis=1, keepdims=True)                        # (B,1,1)
        sel = jnp.min(jnp.where(cur >= m, row_ids, n_nodes),
                      axis=1, keepdims=True)                           # argmax row
        hit = row_ids == sel                                           # (B,N,1)
        row = jnp.sum(jnp.where(hit, h, 0.0), axis=1, keepdims=True)   # (B,1,D)
        # Direct per-row store; the (B,1,D) store is sublane-masked either way,
        # so no accumulator / where-chain is kept around.
        o_ref[:, j:j + 1, :] = (row * m).astype(o_ref.dtype)
        cur = jnp.where(hit, -1.0, cur)


def _cost(B, N, D, K, itemsize, g=1):
    return pl.CostEstimate(
        flops=g * (2 * B * N * D + 3 * B * N * K),
        transcendentals=g * B * N,
        bytes_accessed=g * itemsize * (B * N * D + B * D + B * K * D),
    )


def pool_forward(h, section_feature, k, p=0.0):
    """Pallas equivalent of Pool(k, in_dim, p).forward(h, section_feature)."""
    # TODO(synk): training-mode dropout (p > 0) not implemented; eval semantics
    # (dropout == identity) are reproduced, which matches p == 0 / .eval().
    B, N, D = h.shape
    assert B == 4, "top_k_graph hardcodes batch size 4"
    K = max(2, k)
    assert K <= N, "Pool needs at least max(2, k) nodes to select"

    kernel = functools.partial(_pool_kernel, n_nodes=N, k=K)
    # Single invocation: no grid at all (nothing to pipeline), whole arrays
    # land in VMEM, body runs once.
    return pl.pallas_call(
        kernel,
        out_shape=jax.ShapeDtypeStruct((B, K, D), h.dtype),
        cost_estimate=_cost(B, N, D, K, h.dtype.itemsize),
    )(h, section_feature)


def pool_forward_stacked(h_stack, section_feature_stack, k, p=0.0):
    """G independent Pool invocations fused into one pallas_call.

    h_stack: (G, B, N, D), section_feature_stack: (G, B, 1, D) -> (G, B, K, D).
    Amortizes per-call dispatch / pipeline overhead and lets megacore (v7x)
    shard the leading "parallel" grid axis across TensorCores.
    """
    G, B, N, D = h_stack.shape
    assert B == 4, "top_k_graph hardcodes batch size 4"
    K = max(2, k)
    assert K <= N, "Pool needs at least max(2, k) nodes to select"

    kernel = functools.partial(_pool_kernel, n_nodes=N, k=K)
    return pl.pallas_call(
        kernel,
        out_shape=jax.ShapeDtypeStruct((G, B, K, D), h_stack.dtype),
        grid=(G,),
        in_specs=[
            pl.BlockSpec((None, B, N, D), lambda g: (g, 0, 0, 0)),
            pl.BlockSpec((None, B, 1, D), lambda g: (g, 0, 0, 0)),
        ],
        out_specs=pl.BlockSpec((None, B, K, D), lambda g: (g, 0, 0, 0)),
        compiler_params=pltpu.CompilerParams(
            dimension_semantics=("parallel",)),
        cost_estimate=_cost(B, N, D, K, h_stack.dtype.itemsize, g=G),
    )(h_stack, section_feature_stack)


def pool_reference(h, section_feature, k):
    """Pure-JAX reference mirroring the PyTorch forward."""
    K = max(2, k)
    w = jnp.matmul(h, jnp.transpose(section_feature, (0, 2, 1)),
                   precision=lax.Precision.HIGHEST)[..., 0]           # (B, N)
    scores = jax.nn.sigmoid(w)
    values, idx = lax.top_k(scores, K)                                # (B, K)
    new_h = jnp.take_along_axis(h, idx[..., None], axis=1)            # (B, K, D)
    return new_h * values[..., None]


if __name__ == "__main__":
    key = jax.random.PRNGKey(0)
    k1, k2, k3, k4 = jax.random.split(key, 4)
    B, N, D = 4, 16, 32          # top_k_graph requires B == 4
    k_pool = 4                   # Pool(k=4, in_dim=D, p=0.0)

    # --- single invocation -------------------------------------------------
    h = jax.random.normal(k1, (B, N, D), dtype=jnp.float32)
    section_feature = jax.random.normal(k2, (B, 1, D), dtype=jnp.float32)

    out = pool_forward(h, section_feature, k_pool)
    out = jax.block_until_ready(out)

    ref = pool_reference(h, section_feature, k_pool)
    assert out.shape == (B, max(2, k_pool), D)
    assert jnp.allclose(out, ref, atol=1e-4, rtol=1e-4), "Pallas output != reference"

    # --- batched invocations (G Pool calls in one pallas_call) -------------
    G = 8
    h_stack = jax.random.normal(k3, (G, B, N, D), dtype=jnp.float32)
    sf_stack = jax.random.normal(k4, (G, B, 1, D), dtype=jnp.float32)

    out_stack = pool_forward_stacked(h_stack, sf_stack, k_pool)
    out_stack = jax.block_until_ready(out_stack)

    ref_stack = jax.vmap(lambda a, b: pool_reference(a, b, k_pool))(h_stack, sf_stack)
    assert out_stack.shape == (G, B, max(2, k_pool), D)
    assert jnp.allclose(out_stack, ref_stack, atol=1e-4, rtol=1e-4), \
        "Batched Pallas output != reference"

    print("KERNEL_OK")
</pallas_src>

<mosaic_0001>
module attributes {stable_mosaic.version = 11 : i64} {
  func.func @_pool_kernel(%arg0: memref<4x16x32xf32, #tpu.memory_space<vmem>>, %arg1: memref<4x1x32xf32, #tpu.memory_space<vmem>>, %arg2: memref<4x4x32xf32, #tpu.memory_space<vmem>>) attributes {dimension_semantics = [], scalar_prefetch = 0 : i64, scratch_operands = 0 : i64, tpu.core_type = #tpu.core_type<tc>} {
    %c0 = arith.constant 0 : index
    %c0_0 = arith.constant 0 : index
    %c0_1 = arith.constant 0 : index
    %0 = vector.load %arg0[%c0, %c0_0, %c0_1] : memref<4x16x32xf32, #tpu.memory_space<vmem>>, vector<4x16x32xf32>
    %c0_2 = arith.constant 0 : index
    %c0_3 = arith.constant 0 : index
    %c0_4 = arith.constant 0 : index
    %1 = vector.load %arg1[%c0_2, %c0_3, %c0_4] : memref<4x1x32xf32, #tpu.memory_space<vmem>>, vector<4x1x32xf32>
    %2 = vector.broadcast %1 : vector<4x1x32xf32> to vector<4x16x32xf32>
    %3 = arith.mulf %0, %2 : vector<4x16x32xf32>
    %cst = arith.constant dense<0.000000e+00> : vector<4x16xf32>
    %4 = vector.multi_reduction <add>, %3, %cst [2] : vector<4x16x32xf32> to vector<4x16xf32>
    %5 = vector.shape_cast %4 : vector<4x16xf32> to vector<4x16x1xf32>
    %6 = arith.negf %5 : vector<4x16x1xf32>
    %7 = math.exp %6 : vector<4x16x1xf32>
    %cst_5 = arith.constant 1.000000e+00 : f32
    %8 = vector.broadcast %cst_5 : f32 to vector<4x16x1xf32>
    %9 = arith.addf %8, %7 : vector<4x16x1xf32>
    %10 = arith.divf %8, %9 : vector<4x16x1xf32>
    %11 = tpu.iota {dimensions = array<i32: 1>} : vector<4x16x1xi32>
    %cst_6 = arith.constant dense<0xFF800000> : vector<4x1xf32>
    %12 = vector.multi_reduction <maximumf>, %10, %cst_6 [1] : vector<4x16x1xf32> to vector<4x1xf32>
    %13 = vector.shape_cast %12 : vector<4x1xf32> to vector<4x1x1xf32>
    %14 = vector.broadcast %13 : vector<4x1x1xf32> to vector<4x16x1xf32>
    %15 = arith.cmpf oge, %10, %14 : vector<4x16x1xf32>
    %c16_i32 = arith.constant 16 : i32
    %16 = vector.broadcast %c16_i32 : i32 to vector<4x16x1xi32>
    %17 = arith.select %15, %11, %16 : vector<4x16x1xi1>, vector<4x16x1xi32>
    %cst_7 = arith.constant dense<2147483647> : vector<4x1xi32>
    %18 = vector.multi_reduction <minsi>, %17, %cst_7 [1] : vector<4x16x1xi32> to vector<4x1xi32>
    %19 = vector.shape_cast %18 : vector<4x1xi32> to vector<4x1x1xi32>
    %20 = vector.broadcast %19 : vector<4x1x1xi32> to vector<4x16x1xi32>
    %21 = arith.cmpi eq, %11, %20 : vector<4x16x1xi32>
    %cst_8 = arith.constant 0.000000e+00 : f32
    %22 = vector.shape_cast %21 : vector<4x16x1xi1> to vector<4x16x1xi1>
    %23 = vector.broadcast %22 : vector<4x16x1xi1> to vector<4x16x32xi1>
    %24 = vector.broadcast %cst_8 : f32 to vector<4x16x32xf32>
    %25 = arith.select %23, %0, %24 : vector<4x16x32xi1>, vector<4x16x32xf32>
    %cst_9 = arith.constant dense<0.000000e+00> : vector<4x32xf32>
    %26 = vector.multi_reduction <add>, %25, %cst_9 [1] : vector<4x16x32xf32> to vector<4x32xf32>
    %27 = vector.shape_cast %26 : vector<4x32xf32> to vector<4x1x32xf32>
    %28 = vector.broadcast %13 : vector<4x1x1xf32> to vector<4x1x32xf32>
    %29 = arith.mulf %27, %28 : vector<4x1x32xf32>
    %c0_10 = arith.constant 0 : index
    %c0_11 = arith.constant 0 : index
    %c0_12 = arith.constant 0 : index
    %30 = vector.load %arg2[%c0_10, %c0_11, %c0_12] : memref<4x4x32xf32, #tpu.memory_space<vmem>>, vector<4x1x32xf32>
    tpu.vector_store %arg2[%c0_10, %c0_11, %c0_12], %29 {strides = array<i32>} : memref<4x4x32xf32, #tpu.memory_space<vmem>>, vector<4x1x32xf32>,
    %cst_13 = arith.constant -1.000000e+00 : f32
    %31 = vector.broadcast %cst_13 : f32 to vector<4x16x1xf32>
    %32 = arith.select %21, %31, %10 : vector<4x16x1xi1>, vector<4x16x1xf32>
    %cst_14 = arith.constant dense<0xFF800000> : vector<4x1xf32>
    %33 = vector.multi_reduction <maximumf>, %32, %cst_14 [1] : vector<4x16x1xf32> to vector<4x1xf32>
    %34 = vector.shape_cast %33 : vector<4x1xf32> to vector<4x1x1xf32>
    %35 = vector.broadcast %34 : vector<4x1x1xf32> to vector<4x16x1xf32>
    %36 = arith.cmpf oge, %32, %35 : vector<4x16x1xf32>
    %c16_i32_15 = arith.constant 16 : i32
    %37 = vector.broadcast %c16_i32_15 : i32 to vector<4x16x1xi32>
    %38 = arith.select %36, %11, %37 : vector<4x16x1xi1>, vector<4x16x1xi32>
    %cst_16 = arith.constant dense<2147483647> : vector<4x1xi32>
    %39 = vector.multi_reduction <minsi>, %38, %cst_16 [1] : vector<4x16x1xi32> to vector<4x1xi32>
    %40 = vector.shape_cast %39 : vector<4x1xi32> to vector<4x1x1xi32>
    %41 = vector.broadcast %40 : vector<4x1x1xi32> to vector<4x16x1xi32>
    %42 = arith.cmpi eq, %11, %41 : vector<4x16x1xi32>
    %cst_17 = arith.constant 0.000000e+00 : f32
    %43 = vector.shape_cast %42 : vector<4x16x1xi1> to vector<4x16x1xi1>
    %44 = vector.broadcast %43 : vector<4x16x1xi1> to vector<4x16x32xi1>
    %45 = vector.broadcast %cst_17 : f32 to vector<4x16x32xf32>
    %46 = arith.select %44, %0, %45 : vector<4x16x32xi1>, vector<4x16x32xf32>
    %cst_18 = arith.constant dense<0.000000e+00> : vector<4x32xf32>
    %47 = vector.multi_reduction <add>, %46, %cst_18 [1] : vector<4x16x32xf32> to vector<4x32xf32>
    %48 = vector.shape_cast %47 : vector<4x32xf32> to vector<4x1x32xf32>
    %49 = vector.broadcast %34 : vector<4x1x1xf32> to vector<4x1x32xf32>
    %50 = arith.mulf %48, %49 : vector<4x1x32xf32>
    %c0_19 = arith.constant 0 : index
    %c1 = arith.constant 1 : index
    %c0_20 = arith.constant 0 : index
    %51 = vector.load %arg2[%c0_19, %c1, %c0_20] : memref<4x4x32xf32, #tpu.memory_space<vmem>>, vector<4x1x32xf32>
    tpu.vector_store %arg2[%c0_19, %c1, %c0_20], %50 {strides = array<i32>} : memref<4x4x32xf32, #tpu.memory_space<vmem>>, vector<4x1x32xf32>,
    %cst_21 = arith.constant -1.000000e+00 : f32
    %52 = vector.broadcast %cst_21 : f32 to vector<4x16x1xf32>
    %53 = arith.select %42, %52, %32 : vector<4x16x1xi1>, vector<4x16x1xf32>
    %cst_22 = arith.constant dense<0xFF800000> : vector<4x1xf32>
    %54 = vector.multi_reduction <maximumf>, %53, %cst_22 [1] : vector<4x16x1xf32> to vector<4x1xf32>
    %55 = vector.shape_cast %54 : vector<4x1xf32> to vector<4x1x1xf32>
    %56 = vector.broadcast %55 : vector<4x1x1xf32> to vector<4x16x1xf32>
    %57 = arith.cmpf oge, %53, %56 : vector<4x16x1xf32>
    %c16_i32_23 = arith.constant 16 : i32
    %58 = vector.broadcast %c16_i32_23 : i32 to vector<4x16x1xi32>
    %59 = arith.select %57, %11, %58 : vector<4x16x1xi1>, vector<4x16x1xi32>
    %cst_24 = arith.constant dense<2147483647> : vector<4x1xi32>
    %60 = vector.multi_reduction <minsi>, %59, %cst_24 [1] : vector<4x16x1xi32> to vector<4x1xi32>
    %61 = vector.shape_cast %60 : vector<4x1xi32> to vector<4x1x1xi32>
    %62 = vector.broadcast %61 : vector<4x1x1xi32> to vector<4x16x1xi32>
    %63 = arith.cmpi eq, %11, %62 : vector<4x16x1xi32>
    %cst_25 = arith.constant 0.000000e+00 : f32
    %64 = vector.shape_cast %63 : vector<4x16x1xi1> to vector<4x16x1xi1>
    %65 = vector.broadcast %64 : vector<4x16x1xi1> to vector<4x16x32xi1>
    %66 = vector.broadcast %cst_25 : f32 to vector<4x16x32xf32>
    %67 = arith.select %65, %0, %66 : vector<4x16x32xi1>, vector<4x16x32xf32>
    %cst_26 = arith.constant dense<0.000000e+00> : vector<4x32xf32>
    %68 = vector.multi_reduction <add>, %67, %cst_26 [1] : vector<4x16x32xf32> to vector<4x32xf32>
    %69 = vector.shape_cast %68 : vector<4x32xf32> to vector<4x1x32xf32>
    %70 = vector.broadcast %55 : vector<4x1x1xf32> to vector<4x1x32xf32>
    %71 = arith.mulf %69, %70 : vector<4x1x32xf32>
    %c0_27 = arith.constant 0 : index
    %c2 = arith.constant 2 : index
    %c0_28 = arith.constant 0 : index
    %72 = vector.load %arg2[%c0_27, %c2, %c0_28] : memref<4x4x32xf32, #tpu.memory_space<vmem>>, vector<4x1x32xf32>
    tpu.vector_store %arg2[%c0_27, %c2, %c0_28], %71 {strides = array<i32>} : memref<4x4x32xf32, #tpu.memory_space<vmem>>, vector<4x1x32xf32>,
    %cst_29 = arith.constant -1.000000e+00 : f32
    %73 = vector.broadcast %cst_29 : f32 to vector<4x16x1xf32>
    %74 = arith.select %63, %73, %53 : vector<4x16x1xi1>, vector<4x16x1xf32>
    %cst_30 = arith.constant dense<0xFF800000> : vector<4x1xf32>
    %75 = vector.multi_reduction <maximumf>, %74, %cst_30 [1] : vector<4x16x1xf32> to vector<4x1xf32>
    %76 = vector.shape_cast %75 : vector<4x1xf32> to vector<4x1x1xf32>
    %77 = vector.broadcast %76 : vector<4x1x1xf32> to vector<4x16x1xf32>
    %78 = arith.cmpf oge, %74, %77 : vector<4x16x1xf32>
    %c16_i32_31 = arith.constant 16 : i32
    %79 = vector.broadcast %c16_i32_31 : i32 to vector<4x16x1xi32>
    %80 = arith.select %78, %11, %79 : vector<4x16x1xi1>, vector<4x16x1xi32>
    %cst_32 = arith.constant dense<2147483647> : vector<4x1xi32>
    %81 = vector.multi_reduction <minsi>, %80, %cst_32 [1] : vector<4x16x1xi32> to vector<4x1xi32>
    %82 = vector.shape_cast %81 : vector<4x1xi32> to vector<4x1x1xi32>
    %83 = vector.broadcast %82 : vector<4x1x1xi32> to vector<4x16x1xi32>
    %84 = arith.cmpi eq, %11, %83 : vector<4x16x1xi32>
    %cst_33 = arith.constant 0.000000e+00 : f32
    %85 = vector.shape_cast %84 : vector<4x16x1xi1> to vector<4x16x1xi1>
    %86 = vector.broadcast %85 : vector<4x16x1xi1> to vector<4x16x32xi1>
    %87 = vector.broadcast %cst_33 : f32 to vector<4x16x32xf32>
    %88 = arith.select %86, %0, %87 : vector<4x16x32xi1>, vector<4x16x32xf32>
    %cst_34 = arith.constant dense<0.000000e+00> : vector<4x32xf32>
    %89 = vector.multi_reduction <add>, %88, %cst_34 [1] : vector<4x16x32xf32> to vector<4x32xf32>
    %90 = vector.shape_cast %89 : vector<4x32xf32> to vector<4x1x32xf32>
    %91 = vector.broadcast %76 : vector<4x1x1xf32> to vector<4x1x32xf32>
    %92 = arith.mulf %90, %91 : vector<4x1x32xf32>
    %c0_35 = arith.constant 0 : index
    %c3 = arith.constant 3 : index
    %c0_36 = arith.constant 0 : index
    %93 = vector.load %arg2[%c0_35, %c3, %c0_36] : memref<4x4x32xf32, #tpu.memory_space<vmem>>, vector<4x1x32xf32>
    tpu.vector_store %arg2[%c0_35, %c3, %c0_36], %92 {strides = array<i32>} : memref<4x4x32xf32, #tpu.memory_space<vmem>>, vector<4x1x32xf32>,
    return
  }
}

</mosaic_0001>

<bundles_post_ra>
// kernel: tpu_custom_call.1
= control target key start
LH: loop header
LB: loop body
LE: loop exit
PB: predicated region body
PF: predicated region fallthrough
CT: control target
= control target key end

     0   :  { %7 = vsyncpa [#allocation3], 0  ;;  %s1481_s0 = inlined_call_operand.hbm [shape: f32[4,16,32], index: 0, kind: input, shape index: {}]   ;;  %s1482_s1 = inlined_call_operand.hbm [shape: f32[4,1,32], index: 1, kind: input, shape index: {}]   ;;  %s1483_s2 = inlined_call_operand.hbm [shape: f32[4,4,32], index: 2, kind: output, shape index: {}]  }
   0x1   :  { %8 = vsyncpa [#allocation6], 0 }
   0x2   :  { %9 = vsyncpa [#allocation4], 0  ;;  %s992_s9 = smov [#allocation2]   ;;  %s920_s13 = scalar_lea.hbm %s1481_s0, 1024 }
   0x3   :  { %s15_s10 = sshll.u32 %s992_s9, 4  ;;  %p921_p0 = scmp.ne.s32.totalorder %s1481_s0, %s920_s13  ;;  %s16_s10 = int_to_ptr.vmem [resolvable:$true] %s15_s10 }
   0x4   :  { %p924_p1 = scmp.lt.u32.totalorder %s920_s13, %s1481_s0 }
   0x6   :  { %p926_p2 = pnand %p924_p1, %p921_p0 }
   0x8   :  { %929 = shalt.err (!%p926_p2)
}
   0x9   :  { %s930_s18 = scalar_lea.vmem %s16_s10, 1024  ;;  %p935_p4 = scmp.lt.s32.totalorder %s16_s10, %s16_s10 }
   0xa   :  { %p931_p3 = scmp.ne.s32.totalorder %s16_s10, %s930_s18  ;;  %p936_p5 = scmp.lt.s32.totalorder %s930_s18, %s930_s18 }
   0xc   :  { %p937_p6 = por %p936_p5, %p935_p4 }
   0xe   :  { %p938_p7 = pnand %p937_p6, %p931_p3 }
  0x10   :  { %941 = shalt.err (!%p938_p7)
}
  0x11   :  { %s993_s19 = smov 128   ;;  %s994_s20 = smov 8  }
  0x12   :  { %21 = dma.hbm_to_vmem [thread:$0]  %s1481_s0, 1024, %s16_s10, [#allocation3], %s993_s19, %s993_s19, %s994_s20  }
  0x13   :  { %s995_s23 = smov [#allocation5]   ;;  %s942_s27 = scalar_lea.hbm %s1482_s1, 64 }
  0x14   :  { %s27_s24 = sshll.u32 %s995_s23, 4  ;;  %p943_p8 = scmp.ne.s32.totalorder %s1482_s1, %s942_s27  ;;  %s28_s24 = int_to_ptr.vmem [resolvable:$true] %s27_s24 }
  0x15   :  { %p946_p9 = scmp.lt.u32.totalorder %s942_s27, %s1482_s1 }
  0x17   :  { %p948_p10 = pnand %p946_p9, %p943_p8 }
  0x19   :  { %951 = shalt.err (!%p948_p10)
}
  0x1a   :  { %s952_s4 = scalar_lea.vmem %s28_s24, 64  ;;  %p957_p12 = scmp.lt.s32.totalorder %s28_s24, %s28_s24 }
  0x1b   :  { %p953_p11 = scmp.ne.s32.totalorder %s28_s24, %s952_s4  ;;  %p958_p13 = scmp.lt.s32.totalorder %s952_s4, %s952_s4 }
  0x1d   :  { %p959_p0 = por %p958_p13, %p957_p12 }
  0x1f   :  { %p960_p1 = pnand %p959_p0, %p953_p11 }
  0x21   :  { %963 = shalt.err (!%p960_p1)
}
  0x22   :  { %s996_s0 = smov 16   ;;  %s997_s5 = smov 1  }
  0x23   :  { %33 = dma.hbm_to_vmem [thread:$0]  %s1482_s1, 64, %s28_s24, [#allocation6], %s996_s0, %s996_s0, %s997_s5  }
  0x24   :  { %986 = dma.done.wait [#allocation3], 1024  }
  0x25   :  { %987 = vsyncadd [#allocation3], 4294966272 }
  0x26   :  { %988 = dma.done.wait [#allocation6], 64  }
  0x27   :  { %989 = vsyncadd [#allocation6], 4294967232  ;;  %v1040_v0 = vld [vmem:[#allocation2 + $0x10] sm:$0xff]  ;;  %v860_v1 = vld [vmem:[#allocation5 + $0x1] ss:$0 sm:$0xff]  ;;  %vm84_vm0 = vcmask 261120  }
  0x28   :  { %v1042_v2 = vld [vmem:[#allocation2] sm:$0xff]  ;;  %v78_v3 = vmul.f32 %v860_v1, %v1040_v0  ;;  %v1045_v5 = vld [vmem:[#allocation2 + $0x18] sm:$0xff]  ;;  %v1047_v6 = vld [vmem:[#allocation2 + $0x8] sm:$0xff]  ;;  %s998_s1 = smov [#allocation7]  }
  0x29   :  { %v859_v4 = vld [vmem:[#allocation5] ss:$0 sm:$0xff]  ;;  %v79_v8 = vmul.f32 %v860_v1, %v1045_v5  ;;  %v1052_v10 = vld [vmem:[#allocation2 + $0x28] sm:$0xff]  ;;  %v861_v11 = vld [vmem:[#allocation5 + $0x2] ss:$0 sm:$0xff]  ;;  %s846_s8 = sshll.u32 %s998_s1, 4  ;;  %s847_s8 = int_to_ptr.vmem [resolvable:$true] %s846_s8 }
  0x2a   :  { %v76_v7 = vmul.f32 %v859_v4, %v1042_v2  ;;  %v77_v9 = vmul.f32 %v859_v4, %v1047_v6  ;;  %v91_v12 = vsel %vm84_vm0, %v78_v3, 0.0  ;;  %v1055_v13 = vld [vmem:[#allocation2 + $0x20] sm:$0xff]  ;;  %v81_v16 = vmul.f32 %v861_v11, %v1052_v10  ;;  %v1062_v19 = vld [vmem:[#allocation2 + $0x38] sm:$0xff]  ;;  %v1064_v21 = vld [vmem:[#allocation2 + $0x30] sm:$0xff]  ;;  %s964_s9 = scalar_lea.vmem %s847_s8, 256  ;;  %p969_p3 = scmp.lt.s32.totalorder %s847_s8, %s847_s8 }
  0x2b   :  { %92 = vadd.xlane.f32.xlu1 %v91_v12  ;;  %v94_v15 = vsel %vm84_vm0, %v79_v8, 0.0  ;;  %v80_v18 = vmul.f32 %v861_v11, %v1055_v13  ;;  %v862_v20 = vld [vmem:[#allocation5 + $0x3] ss:$0 sm:$0xff]  ;;  %v157_v8 = vlaneseq  ;;  %p965_p2 = scmp.ne.s32.totalorder %s847_s8, %s964_s9  ;;  %p970_p4 = scmp.lt.s32.totalorder %s964_s9, %s964_s9 }
  0x2c   :  { %v85_v14 = vsel %vm84_vm0, %v76_v7, 0.0  ;;  %v88_v17 = vsel %vm84_vm0, %v77_v9, 0.0  ;;  %v100_v22 = vsel %vm84_vm0, %v81_v16, 0.0  ;;  %v83_v23 = vmul.f32 %v862_v20, %v1062_v19 }
  0x2d   :  { %86 = vadd.xlane.f32.xlu0 %v85_v14  ;;  %v97_v24 = vsel %vm84_vm0, %v80_v18, 0.0  ;;  %v82_v25 = vmul.f32 %v862_v20, %v1064_v21  ;;  %p971_p5 = por %p970_p4, %p969_p3 }
  0x2e   :  { %v106_v26 = vsel %vm84_vm0, %v83_v23, 0.0 }
  0x2f   :  { %95 = vadd.xlane.f32.xlu1 %v94_v15  ;;  %v103_v27 = vsel %vm84_vm0, %v82_v25, 0.0  ;;  %p972_p6 = pnand %p971_p5, %p965_p2 }
  0x31   :  { %89 = vadd.xlane.f32.xlu0 %v88_v17  ;;  %v1090_v17 = vshrl.u32 %v157_v8, 7 }
  0x33   :  { %101 = vadd.xlane.f32.xlu1 %v100_v22 }
  0x35   :  { %98 = vadd.xlane.f32.xlu0 %v97_v24 }
  0x37   :  { %107 = vadd.xlane.f32.xlu1 %v106_v26 }
  0x39   :  { %104 = vadd.xlane.f32.xlu0 %v103_v27 }
  0xb8   :  { %v93_v28 = vpop.xlane.xlu1 %92 }
  0xb9   :  { %v865_v29 = vmul.f32 -1.442695, %v93_v28  ;;  %v1097_v28 = vadd.s32 8, %v1090_v17 }
  0xba   :  { %v87_v30 = vpop.xlane.xlu0 %86 }
  0xbb   :  { %v863_v31 = vmul.f32 -1.442695, %v87_v30  ;;  %880 = vpow2.f32 %v865_v29 }
  0xbc   :  { %v96_v32 = vpop.xlane.xlu1 %95 }
  0xbd   :  { %882 = vpow2.f32 %v863_v31  ;;  %v866_v33 = vmul.f32 -1.442695, %v96_v32 }
  0xbe   :  { %v90_v34 = vpop.xlane.xlu0 %89 }
  0xbf   :  { %v864_v35 = vmul.f32 -1.442695, %v90_v34  ;;  %884 = vpow2.f32 %v866_v33 }
  0xc0   :  { %v102_v36 = vpop.xlane.xlu1 %101 }
  0xc1   :  { %886 = vpow2.f32 %v864_v35  ;;  %v868_v37 = vmul.f32 -1.442695, %v102_v36 }
  0xc2   :  { %v99_v38 = vpop.xlane.xlu0 %98 }
  0xc3   :  { %v867_v39 = vmul.f32 -1.442695, %v99_v38  ;;  %888 = vpow2.f32 %v868_v37 }
  0xc4   :  { %v108_v40 = vpop.xlane.xlu1 %107 }
  0xc5   :  { %890 = vpow2.f32 %v867_v39  ;;  %v881_v41 = vpop.eup %880  ;;  %v870_v42 = vmul.f32 -1.442695, %v108_v40 }
  0xc6   :  { %v105_v43 = vpop.xlane.xlu0 %104  ;;  %v135_v45 = vadd.f32 1.0, %v881_v41 }
  0xc7   :  { %v883_v44 = vpop.eup %882  ;;  %v869_v46 = vmul.f32 -1.442695, %v105_v43  ;;  %892 = vpow2.f32 %v870_v42 }
  0xc8   :  { %v133_v47 = vadd.f32 1.0, %v883_v44  ;;  %894 = vrcp.f32 %v135_v45 }
  0xc9   :  { %v885_v48 = vpop.eup %884  ;;  %896 = vpow2.f32 %v869_v46 }
  0xca   :  { %v136_v50 = vadd.f32 1.0, %v885_v48  ;;  %898 = vrcp.f32 %v133_v47 }
  0xcb   :  { %v887_v49 = vpop.eup %886 }
  0xcc   :  { %v134_v51 = vadd.f32 1.0, %v887_v49  ;;  %900 = vrcp.f32 %v136_v50 }
  0xcd   :  { %v889_v52 = vpop.eup %888 }
  0xce   :  { %902 = vrcp.f32 %v134_v51  ;;  %v138_v54 = vadd.f32 1.0, %v889_v52 }
  0xcf   :  { %v891_v53 = vpop.eup %890 }
  0xd0   :  { %v137_v55 = vadd.f32 1.0, %v891_v53  ;;  %904 = vrcp.f32 %v138_v54 }
  0xd1   :  { %v893_v56 = vpop.eup %892 }
  0xd2   :  { %906 = vrcp.f32 %v137_v55  ;;  %v140_v57 = vadd.f32 1.0, %v893_v56  ;;  %v1072_v58 = vpop.eup %894 }
  0xd3   :  { %v897_v59 = vpop.eup %896 }
  0xd4   :  { %v1074_v60 = vpop.eup %898  ;;  %908 = vrcp.f32 %v140_v57  ;;  %v139_v61 = vadd.f32 1.0, %v897_v59 }
  0xd6   :  { %v1076_v62 = vpop.eup %900  ;;  %910 = vrcp.f32 %v139_v61 }
  0xd7   :  { %v167_v1 = vmax.f32 %v1072_v58, %v1076_v62 }
  0xd8   :  { %v1078_v63 = vpop.eup %902 }
  0xd9   :  { %v160_v3 = vmax.f32 %v1074_v60, %v1078_v63  ;;  %v168_v4 = vrot.slane %v167_v1, 4 }
  0xda   :  { %v1084_v7 = vpop.eup %904 }
  0xdb   :  { %v161_v9 = vrot.slane %v160_v3, 4  ;;  %v169_v12 = vmax.f32 %v167_v1, %v168_v4 }
  0xdc   :  { %v1086_v11 = vpop.eup %906 }
  0xdd   :  { %v162_v14 = vmax.f32 %v160_v3, %v161_v9  ;;  %v174_v15 = vmax.f32 %v1086_v11, %v1084_v7  ;;  %v170_v16 = vrot.slane %v169_v12, 2 }
  0xde   :  { %v1092_v22 = vpop.eup %908 }
  0xdf   :  { %v163_v18 = vrot.slane %v162_v14, 2  ;;  %v175_v20 = vrot.slane %v174_v15, 4  ;;  %v171_v23 = vmax.f32 %v169_v12, %v170_v16 }
  0xe0   :  { %v1094_v26 = vpop.eup %910 }
  0xe1   :  { %v164_v24 = vmax.f32 %v162_v14, %v163_v18  ;;  %v176_v25 = vmax.f32 %v174_v15, %v175_v20  ;;  %v172_v27 = vrot.slane %v171_v23, 1  ;;  %v181_v31 = vmax.f32 %v1094_v26, %v1092_v22 }
  0xe3   :  { %v165_v29 = vrot.slane %v164_v24, 1  ;;  %v177_v30 = vrot.slane %v176_v25, 2  ;;  %v1101_v32 = vmax.f32 %v171_v23, %v172_v27  ;;  %v182_v35 = vrot.slane %v181_v31, 4 }
  0xe5   :  { %v1103_v33 = vmax.f32 %v164_v24, %v165_v29  ;;  %v178_v34 = vmax.f32 %v176_v25, %v177_v30  ;;  %vm190_vm1 = vcmp.ge.f32.partialorder %v1072_v58, %v1101_v32  ;;  %vm191_vm2 = vcmp.ge.f32.partialorder %v1076_v62, %v1101_v32 }
  0xe6   :  { %v198_v36 = vsel %vm190_vm1, %v1090_v17, 16  ;;  %v199_v37 = vsel %vm191_vm2, %v1097_v28, 16  ;;  %v183_v42 = vmax.f32 %v181_v31, %v182_v35 }
  0xe7   :  { %vm188_vm3 = vcmp.ge.f32.partialorder %v1074_v60, %v1103_v33  ;;  %vm189_vm4 = vcmp.ge.f32.partialorder %v1078_v63, %v1103_v33  ;;  %vm215_vm5 = vcmp.lt.s32.totalorder %v198_v36, %v199_v37  ;;  %v179_v40 = vrot.slane %v178_v34, 1 }
  0xe8   :  { %v196_v38 = vsel %vm188_vm3, %v1090_v17, 16  ;;  %v197_v39 = vsel %vm189_vm4, %v1097_v28, 16  ;;  %v216_v41 = vsel %vm215_vm5, %v198_v36, %v199_v37  ;;  %v184_v47 = vrot.slane %v183_v42, 2 }
  0xe9   :  { %vm204_vm6 = vcmp.lt.s32.totalorder %v196_v38, %v197_v39  ;;  %v217_v43 = vrot.slane %v216_v41, 4  ;;  %v1117_v45 = vmax.f32 %v178_v34, %v179_v40 }
  0xea   :  { %v205_v44 = vsel %vm204_vm6, %v196_v38, %v197_v39  ;;  %v185_v53 = vmax.f32 %v183_v42, %v184_v47 }
  0xeb   :  { %v206_v46 = vrot.slane %v205_v44, 4  ;;  %vm218_vm7 = vcmp.lt.s32.totalorder %v216_v41, %v217_v43  ;;  %vm192_vm8 = vcmp.ge.f32.partialorder %v1086_v11, %v1117_v45  ;;  %vm193_vm9 = vcmp.ge.f32.partialorder %v1084_v7, %v1117_v45 }
  0xec   :  { %v219_v48 = vsel %vm218_vm7, %v216_v41, %v217_v43  ;;  %v200_v49 = vsel %vm192_vm8, %v1090_v17, 16  ;;  %v201_v50 = vsel %vm193_vm9, %v1097_v28, 16  ;;  %v186_v57 = vrot.slane %v185_v53, 1 }
  0xed   :  { %vm207_vm10 = vcmp.lt.s32.totalorder %v205_v44, %v206_v46  ;;  %v220_v51 = vrot.slane %v219_v48, 2  ;;  %vm226_vm11 = vcmp.lt.s32.totalorder %v200_v49, %v201_v50 }
  0xee   :  { %v208_v52 = vsel %vm207_vm10, %v205_v44, %v206_v46  ;;  %v227_v55 = vsel %vm226_vm11, %v200_v49, %v201_v50  ;;  %v1125_v3 = vmax.f32 %v185_v53, %v186_v57  ;;  %vm320_vm10 = vcmask 253952  }
  0xef   :  { %v209_v54 = vrot.slane %v208_v52, 2  ;;  %vm221_vm12 = vcmp.lt.s32.totalorder %v219_v48, %v220_v51  ;;  %v228_v56 = vrot.slane %v227_v55, 4 }
  0xf0   :  { %v222_v59 = vsel %vm221_vm12, %v219_v48, %v220_v51  ;;  %vm194_vm1 = vcmp.ge.f32.partialorder %v1094_v26, %v1125_v3  ;;  %vm195_vm2 = vcmp.ge.f32.partialorder %v1092_v22, %v1125_v3 }
  0xf1   :  { %vm210_vm13 = vcmp.lt.s32.totalorder %v208_v52, %v209_v54  ;;  %v223_v61 = vrot.slane %v222_v59, 1  ;;  %vm229_vm14 = vcmp.lt.s32.totalorder %v227_v55, %v228_v56  ;;  %v202_v14 = vsel %vm194_vm1, %v1090_v17, 16 }
  0xf2   :  { %v211_v1 = vsel %vm210_vm13, %v208_v52, %v209_v54  ;;  %v230_v8 = vsel %vm229_vm14, %v227_v55, %v228_v56  ;;  %v203_v15 = vsel %vm195_vm2, %v1097_v28, 16 }
  0xf3   :  { %v212_v4 = vrot.slane %v211_v1, 1  ;;  %vm224_vm15 = vcmp.lt.s32.totalorder %v222_v59, %v223_v61  ;;  %v231_v9 = vrot.slane %v230_v8, 2  ;;  %vm237_vm9 = vcmp.lt.s32.totalorder %v202_v14, %v203_v15 }
  0xf4   :  { %v225_v12 = vsel %vm224_vm15, %v222_v59, %v223_v61  ;;  %v238_v47 = vsel %vm237_vm9, %v202_v14, %v203_v15 }
  0xf5   :  { %vm213_vm3 = vcmp.lt.s32.totalorder %v211_v1, %v212_v4  ;;  %vm250_vm4 = vcmp.eq.s32.totalorder %v1090_v17, %v225_v12  ;;  %vm251_vm5 = vcmp.eq.s32.totalorder %v1097_v28, %v225_v12  ;;  %vm1135_vm6 = vcmp.lt.s32.totalorder %v230_v8, %v231_v9 }
  0xf6   :  { %v214_v16 = vsel %vm213_vm3, %v211_v1, %v212_v4  ;;  %v274_v20 = vsel %vm250_vm4, %v1040_v0, 0.0  ;;  %v275_v23 = vsel %vm251_vm5, %v1045_v5, 0.0  ;;  %v1142_v24 = vsel %vm250_vm4, -1.0, %v1072_v58 }
  0xf7   :  { %v1145_v25 = vsel %vm251_vm5, -1.0, %v1076_v62  ;;  %v289_v27 = vsel %vm84_vm0, %v274_v20, 0.0  ;;  %v290_v29 = vsel %vm84_vm0, %v275_v23, 0.0  ;;  %vm248_vm7 = vcmp.eq.s32.totalorder %v1090_v17, %v214_v16 }
  0xf8   :  { %v340_v30 = vmax.f32 %v1142_v24, %v1145_v25  ;;  %v291_v31 = vadd.f32 %v290_v29, %v289_v27  ;;  %vm249_vm8 = vcmp.eq.s32.totalorder %v1097_v28, %v214_v16  ;;  %v272_v34 = vsel %vm248_vm7, %v1042_v2, 0.0 }
  0xf9   :  { %v1155_v58 = vsel %vm248_vm7, -1.0, %v1074_v60  ;;  %v273_v62 = vsel %vm249_vm8, %v1047_v6, 0.0  ;;  %v280_v36 = vsel %vm84_vm0, %v272_v34, 0.0  ;;  %v1160_v37 = vsel %vm249_vm8, -1.0, %v1078_v63 }
  0xfa   :  { %v341_v35 = vrot.slane %v340_v30, 4  ;;  %v292_v38 = vrot.slane %v291_v31, 4  ;;  %v281_v39 = vsel %vm84_vm0, %v273_v62, 0.0  ;;  %v333_v40 = vmax.f32 %v1155_v58, %v1160_v37 }
  0xfb   :  { %v233_v41 = vsel %vm1135_vm6, %v230_v8, %v231_v9  ;;  %v282_v60 = vadd.f32 %v281_v39, %v280_v36  ;;  %v239_v52 = vrot.slane %v238_v47, 4 }
  0xfc   :  { %v342_v42 = vmax.f32 %v340_v30, %v341_v35  ;;  %v234_v43 = vrot.slane %v233_v41, 1  ;;  %v293_v44 = vadd.f32 %v292_v38, %v291_v31  ;;  %v334_v46 = vrot.slane %v333_v40, 4 }
  0xfd   :  { %v283_v63 = vrot.slane %v282_v60, 4  ;;  %vm240_vm14 = vcmp.lt.s32.totalorder %v238_v47, %v239_v52 }
  0xfe   :  { %v343_v48 = vrot.slane %v342_v42, 2  ;;  %vm235_vm11 = vcmp.lt.s32.totalorder %v233_v41, %v234_v43  ;;  %v294_v49 = vrot.slane %v293_v44, 2  ;;  %v335_v50 = vmax.f32 %v333_v40, %v334_v46 }
  0xff   :  { %v236_v51 = vsel %vm235_vm11, %v233_v41, %v234_v43  ;;  %v284_v54 = vadd.f32 %v283_v63, %v282_v60  ;;  %v241_v31 = vsel %vm240_vm14, %v238_v47, %v239_v52 }
 0x100   :  { %v344_v53 = vmax.f32 %v342_v42, %v343_v48  ;;  %vm252_vm12 = vcmp.eq.s32.totalorder %v1090_v17, %v236_v51  ;;  %vm253_vm13 = vcmp.eq.s32.totalorder %v1097_v28, %v236_v51  ;;  %v295_v55 = vadd.f32 %v294_v49, %v293_v44 }
 0x101   :  { %v336_v56 = vrot.slane %v335_v50, 2  ;;  %v276_v57 = vsel %vm252_vm12, %v1055_v13, 0.0  ;;  %v277_v59 = vsel %vm253_vm13, %v1052_v10, 0.0  ;;  %v285_v1 = vrot.slane %v284_v54, 2 }
 0x102   :  { %v345_v61 = vrot.slane %v344_v53, 1  ;;  %v298_v4 = vsel %vm84_vm0, %v276_v57, 0.0  ;;  %v299_v8 = vsel %vm84_vm0, %v277_v59, 0.0  ;;  %v296_v9 = vrot.slane %v295_v55, 1 }
 0x103   :  { %v337_v12 = vmax.f32 %v335_v50, %v336_v56  ;;  %v300_v14 = vadd.f32 %v299_v8, %v298_v4  ;;  %v1174_v15 = vsel %vm252_vm12, -1.0, %v1086_v11  ;;  %v286_v18 = vadd.f32 %v285_v1, %v284_v54 }
 0x104   :  { %v1176_v16 = vmax.f32 %v344_v53, %v345_v61  ;;  %v1179_v20 = vsel %vm253_vm13, -1.0, %v1084_v7  ;;  %v297_v23 = vadd.f32 %v296_v9, %v295_v55 }
 0x105   :  { %v338_v27 = vrot.slane %v337_v12, 1  ;;  %v301_v29 = vrot.slane %v300_v14, 4  ;;  %v347_v30 = vmax.f32 %v1174_v15, %v1179_v20  ;;  %v287_v11 = vrot.slane %v286_v18, 1 }
 0x106   :  { %vm363_vm15 = vcmp.ge.f32.partialorder %v1142_v24, %v1176_v16  ;;  %vm364_vm1 = vcmp.ge.f32.partialorder %v1145_v25, %v1176_v16  ;;  %v317_v34 = vmul.f32 %v297_v23, %v1101_v32  ;;  %v242_v32 = vrot.slane %v241_v31, 2 }
 0x107   :  { %v371_v7 = vsel %vm363_vm15, %v1090_v17, 16  ;;  %v372_v35 = vsel %vm364_vm1, %v1097_v28, 16  ;;  %v1190_v62 = vmax.f32 %v337_v12, %v338_v27  ;;  %v288_v36 = vadd.f32 %v287_v11, %v286_v18 }
 0x108   :  { %vm388_vm2 = vcmp.lt.s32.totalorder %v371_v7, %v372_v35  ;;  %v302_v38 = vadd.f32 %v301_v29, %v300_v14  ;;  %v348_v39 = vrot.slane %v347_v30, 4  ;;  %322 = vst.msk [vmem:[#allocation7 + $0x4] sm:$0x1] %vm320_vm10, %v317_v34  ;;  %vm243_vm6 = vcmp.lt.s32.totalorder %v241_v31, %v242_v32 }
 0x109   :  { %v389_v40 = vsel %vm388_vm2, %v371_v7, %v372_v35  ;;  %vm361_vm3 = vcmp.ge.f32.partialorder %v1155_v58, %v1190_v62  ;;  %vm362_vm4 = vcmp.ge.f32.partialorder %v1160_v37, %v1190_v62  ;;  %v316_v42 = vmul.f32 %v288_v36, %v1103_v33 }
 0x10a   :  { %v390_v41 = vrot.slane %v389_v40, 4  ;;  %v369_v60 = vsel %vm361_vm3, %v1090_v17, 16  ;;  %v370_v43 = vsel %vm362_vm4, %v1097_v28, 16  ;;  %v303_v44 = vrot.slane %v302_v38, 2 }
 0x10b   :  { %vm377_vm5 = vcmp.lt.s32.totalorder %v369_v60, %v370_v43  ;;  %v349_v46 = vmax.f32 %v347_v30, %v348_v39  ;;  %321 = vst.msk [vmem:[#allocation7] sm:$0x1] %vm320_vm10, %v316_v42  ;;  %v244_v48 = vsel %vm243_vm6, %v241_v31, %v242_v32 }
 0x10c   :  { %vm391_vm7 = vcmp.lt.s32.totalorder %v389_v40, %v390_v41  ;;  %v378_v47 = vsel %vm377_vm5, %v369_v60, %v370_v43  ;;  %v304_v50 = vadd.f32 %v303_v44, %v302_v38  ;;  %v245_v53 = vrot.slane %v244_v48, 1 }
 0x10d   :  { %v392_v63 = vsel %vm391_vm7, %v389_v40, %v390_v41  ;;  %v379_v49 = vrot.slane %v378_v47, 4  ;;  %v350_v51 = vrot.slane %v349_v46, 2 }
 0x10e   :  { %v393_v52 = vrot.slane %v392_v63, 2  ;;  %v305_v33 = vrot.slane %v304_v50, 1  ;;  %vm246_vm11 = vcmp.lt.s32.totalorder %v244_v48, %v245_v53 }
 0x10f   :  { %vm380_vm8 = vcmp.lt.s32.totalorder %v378_v47, %v379_v49  ;;  %v351_v54 = vmax.f32 %v349_v46, %v350_v51  ;;  %v247_v4 = vsel %vm246_vm11, %v244_v48, %v245_v53 }
 0x110   :  { %vm394_vm9 = vcmp.lt.s32.totalorder %v392_v63, %v393_v52  ;;  %v381_v55 = vsel %vm380_vm8, %v378_v47, %v379_v49  ;;  %v306_v59 = vadd.f32 %v305_v33, %v304_v50  ;;  %vm254_vm13 = vcmp.eq.s32.totalorder %v1090_v17, %v247_v4 }
 0x111   :  { %v395_v56 = vsel %vm394_vm9, %v392_v63, %v393_v52  ;;  %v382_v57 = vrot.slane %v381_v55, 2  ;;  %v352_v61 = vrot.slane %v351_v54, 1  ;;  %vm255_vm15 = vcmp.eq.s32.totalorder %v1097_v28, %v247_v4 }
 0x112   :  { %v396_v1 = vrot.slane %v395_v56, 1  ;;  %v318_v8 = vmul.f32 %v306_v59, %v1117_v45  ;;  %v278_v14 = vsel %vm254_vm13, %v1064_v21, 0.0  ;;  %v279_v38 = vsel %vm255_vm15, %v1062_v19, 0.0 }
 0x113   :  { %vm383_vm12 = vcmp.lt.s32.totalorder %v381_v55, %v382_v57  ;;  %v1202_v9 = vmax.f32 %v351_v54, %v352_v61  ;;  %v307_v49 = vsel %vm84_vm0, %v278_v14, 0.0  ;;  %v1252_v50 = vsel %vm254_vm13, -1.0, %v1094_v26 }
 0x114   :  { %vm397_vm14 = vcmp.lt.s32.totalorder %v395_v56, %v396_v1  ;;  %v384_v12 = vsel %vm383_vm12, %v381_v55, %v382_v57  ;;  %323 = vst.msk [vmem:[#allocation7 + $0x8] sm:$0x1] %vm320_vm10, %v318_v8  ;;  %v1257_v55 = vsel %vm255_vm15, -1.0, %v1092_v22 }
 0x115   :  { %v398_v18 = vsel %vm397_vm14, %v395_v56, %v396_v1  ;;  %v385_v23 = vrot.slane %v384_v12, 1  ;;  %vm365_vm1 = vcmp.ge.f32.partialorder %v1174_v15, %v1202_v9  ;;  %vm366_vm2 = vcmp.ge.f32.partialorder %v1179_v20, %v1202_v9 }
 0x116   :  { %vm423_vm3 = vcmp.eq.s32.totalorder %v1090_v17, %v398_v18  ;;  %vm424_vm4 = vcmp.eq.s32.totalorder %v1097_v28, %v398_v18  ;;  %v373_v45 = vsel %vm365_vm1, %v1090_v17, 16  ;;  %v374_v27 = vsel %vm366_vm2, %v1097_v28, 16 }
 0x117   :  { %v447_v21 = vsel %vm423_vm3, %v1040_v0, 0.0  ;;  %v448_v29 = vsel %vm424_vm4, %v1045_v5, 0.0  ;;  %v1221_v30 = vsel %vm423_vm3, -1.0, %v1142_v24  ;;  %v1224_v11 = vsel %vm424_vm4, -1.0, %v1145_v25 }
 0x118   :  { %v462_v31 = vsel %vm84_vm0, %v447_v21, 0.0  ;;  %v463_v34 = vsel %vm84_vm0, %v448_v29, 0.0  ;;  %v512_v7 = vmax.f32 %v1221_v30, %v1224_v11  ;;  %vm386_vm5 = vcmp.lt.s32.totalorder %v384_v12, %v385_v23 }
 0x119   :  { %v464_v35 = vadd.f32 %v463_v34, %v462_v31  ;;  %v387_v36 = vsel %vm386_vm5, %v384_v12, %v385_v23  ;;  %vm399_vm6 = vcmp.lt.s32.totalorder %v373_v45, %v374_v27  ;;  %v354_v26 = vmax.f32 %v1252_v50, %v1257_v55 }
 0x11a   :  { %v513_v24 = vrot.slane %v512_v7, 4  ;;  %vm421_vm7 = vcmp.eq.s32.totalorder %v1090_v17, %v387_v36  ;;  %vm422_vm8 = vcmp.eq.s32.totalorder %v1097_v28, %v387_v36  ;;  %v400_v25 = vsel %vm399_vm6, %v373_v45, %v374_v27 }
 0x11b   :  { %v465_v39 = vrot.slane %v464_v35, 4  ;;  %v445_v40 = vsel %vm421_vm7, %v1042_v2, 0.0  ;;  %v446_v32 = vsel %vm422_vm8, %v1047_v6, 0.0  ;;  %v1238_v41 = vsel %vm421_vm7, -1.0, %v1155_v58 }
 0x11c   :  { %v514_v42 = vmax.f32 %v512_v7, %v513_v24  ;;  %v453_v60 = vsel %vm84_vm0, %v445_v40, 0.0  ;;  %v454_v43 = vsel %vm84_vm0, %v446_v32, 0.0  ;;  %v1243_v19 = vsel %vm422_vm8, -1.0, %v1160_v37 }
 0x11d   :  { %v466_v44 = vadd.f32 %v465_v39, %v464_v35  ;;  %v455_v46 = vadd.f32 %v454_v43, %v453_v60  ;;  %v505_v47 = vmax.f32 %v1238_v41, %v1243_v19  ;;  %v401_v48 = vrot.slane %v400_v25, 4 }
 0x11e   :  { %v515_v63 = vrot.slane %v514_v42, 2  ;;  %v308_v58 = vsel %vm84_vm0, %v279_v38, 0.0  ;;  %v355_v4 = vrot.slane %v354_v26, 4 }
 0x11f   :  { %v467_v51 = vrot.slane %v466_v44, 2  ;;  %v456_v52 = vrot.slane %v455_v46, 4  ;;  %v506_v37 = vrot.slane %v505_v47, 4  ;;  %vm402_vm9 = vcmp.lt.s32.totalorder %v400_v25, %v401_v48 }
 0x120   :  { %v516_v53 = vmax.f32 %v514_v42, %v515_v63  ;;  %v403_v33 = vsel %vm402_vm9, %v400_v25, %v401_v48  ;;  %v309_v54 = vadd.f32 %v308_v58, %v307_v49  ;;  %v356_v7 = vmax.f32 %v354_v26, %v355_v4 }
 0x121   :  { %v468_v56 = vadd.f32 %v467_v51, %v466_v44  ;;  %v457_v57 = vadd.f32 %v456_v52, %v455_v46  ;;  %v507_v59 = vmax.f32 %v505_v47, %v506_v37  ;;  %v404_v61 = vrot.slane %v403_v33, 2 }
 0x122   :  { %v517_v1 = vrot.slane %v516_v53, 1  ;;  %v310_v8 = vrot.slane %v309_v54, 4  ;;  %v357_v60 = vrot.slane %v356_v7, 2 }
 0x123   :  { %v469_v12 = vrot.slane %v468_v56, 1  ;;  %v458_v14 = vrot.slane %v457_v57, 2  ;;  %v508_v18 = vrot.slane %v507_v59, 2  ;;  %vm405_vm11 = vcmp.lt.s32.totalorder %v403_v33, %v404_v61 }
 0x124   :  { %v1261_v23 = vmax.f32 %v516_v53, %v517_v1  ;;  %v406_v45 = vsel %vm405_vm11, %v403_v33, %v404_v61  ;;  %v311_v27 = vadd.f32 %v310_v8, %v309_v54  ;;  %v358_v33 = vmax.f32 %v356_v7, %v357_v60 }
 0x125   :  { %v470_v22 = vadd.f32 %v469_v12, %v468_v56  ;;  %v459_v21 = vadd.f32 %v458_v14, %v457_v57  ;;  %v509_v29 = vmax.f32 %v507_v59, %v508_v18  ;;  %v407_v31 = vrot.slane %v406_v45, 1 }
 0x126   :  { %vm535_vm12 = vcmp.ge.f32.partialorder %v1221_v30, %v1261_v23  ;;  %vm536_vm13 = vcmp.ge.f32.partialorder %v1224_v11, %v1261_v23  ;;  %v312_v34 = vrot.slane %v311_v27, 2  ;;  %v359_v1 = vrot.slane %v358_v33, 1 }
 0x127   :  { %v490_v35 = vmul.f32 %v470_v22, %v1176_v16  ;;  %v543_v36 = vsel %vm535_vm12, %v1090_v17, 16  ;;  %v544_v38 = vsel %vm536_vm13, %v1097_v28, 16  ;;  %v460_v24 = vrot.slane %v459_v21, 1 }
 0x128   :  { %vm560_vm14 = vcmp.lt.s32.totalorder %v543_v36, %v544_v38  ;;  %v510_v25 = vrot.slane %v509_v29, 1  ;;  %vm408_vm15 = vcmp.lt.s32.totalorder %v406_v45, %v407_v31  ;;  %v313_v39 = vadd.f32 %v312_v34, %v311_v27 }
 0x129   :  { %494 = vst.msk [vmem:[#allocation7 + $0x5] sm:$0x1] %vm320_vm10, %v490_v35  ;;  %v561_v40 = vsel %vm560_vm14, %v543_v36, %v544_v38  ;;  %v461_v32 = vadd.f32 %v460_v24, %v459_v21  ;;  %v409_v42 = vsel %vm408_vm15, %v406_v45, %v407_v31  ;;  %v1300_v18 = vmax.f32 %v358_v33, %v359_v1 }
 0x12a   :  { %v562_v43 = vrot.slane %v561_v40, 4  ;;  %v1271_v44 = vmax.f32 %v509_v29, %v510_v25  ;;  %vm425_vm1 = vcmp.eq.s32.totalorder %v1090_v17, %v409_v42  ;;  %vm426_vm2 = vcmp.eq.s32.totalorder %v1097_v28, %v409_v42 }
 0x12b   :  { %v489_v16 = vmul.f32 %v461_v32, %v1190_v62  ;;  %v449_v46 = vsel %vm425_vm1, %v1055_v13, 0.0  ;;  %v450_v47 = vsel %vm426_vm2, %v1052_v10, 0.0  ;;  %v1281_v48 = vsel %vm425_vm1, -1.0, %v1174_v15 }
 0x12c   :  { %vm563_vm3 = vcmp.lt.s32.totalorder %v561_v40, %v562_v43  ;;  %vm533_vm4 = vcmp.ge.f32.partialorder %v1238_v41, %v1271_v44  ;;  %vm534_vm5 = vcmp.ge.f32.partialorder %v1243_v19, %v1271_v44  ;;  %v471_v63 = vsel %vm84_vm0, %v449_v46, 0.0 }
 0x12d   :  { %v564_v49 = vsel %vm563_vm3, %v561_v40, %v562_v43  ;;  %493 = vst.msk [vmem:[#allocation7 + $0x1] sm:$0x1] %vm320_vm10, %v489_v16  ;;  %v541_v13 = vsel %vm533_vm4, %v1090_v17, 16  ;;  %v542_v62 = vsel %vm534_vm5, %v1097_v28, 16  ;;  %v472_v10 = vsel %vm84_vm0, %v450_v47, 0.0 }
 0x12e   :  { %v565_v15 = vrot.slane %v564_v49, 2  ;;  %vm549_vm6 = vcmp.lt.s32.totalorder %v541_v13, %v542_v62  ;;  %v473_v58 = vadd.f32 %v472_v10, %v471_v63  ;;  %v1295_v51 = vsel %vm426_vm2, -1.0, %v1179_v20 }
 0x12f   :  { %v550_v52 = vsel %vm549_vm6, %v541_v13, %v542_v62  ;;  %v519_v37 = vmax.f32 %v1281_v48, %v1295_v51  ;;  %v314_v53 = vrot.slane %v313_v39, 1  ;;  %vm367_vm11 = vcmp.ge.f32.partialorder %v1252_v50, %v1300_v18 }
 0x130   :  { %vm566_vm7 = vcmp.lt.s32.totalorder %v564_v49, %v565_v15  ;;  %v551_v54 = vrot.slane %v550_v52, 4  ;;  %v474_v56 = vrot.slane %v473_v58, 4  ;;  %vm368_vm12 = vcmp.ge.f32.partialorder %v1257_v55, %v1300_v18 }
 0x131   :  { %v567_v57 = vsel %vm566_vm7, %v564_v49, %v565_v15  ;;  %v520_v59 = vrot.slane %v519_v37, 4  ;;  %v315_v61 = vadd.f32 %v314_v53, %v313_v39 }
 0x132   :  { %v568_v8 = vrot.slane %v567_v57, 1  ;;  %vm552_vm8 = vcmp.lt.s32.totalorder %v550_v52, %v551_v54  ;;  %v475_v26 = vadd.f32 %v474_v56, %v473_v58 }
 0x133   :  { %v553_v12 = vsel %vm552_vm8, %v550_v52, %v551_v54  ;;  %v521_v14 = vmax.f32 %v519_v37, %v520_v59  ;;  %v319_v20 = vmul.f32 %v315_v61, %v1125_v3 }
 0x134   :  { %vm569_vm9 = vcmp.lt.s32.totalorder %v567_v57, %v568_v8  ;;  %v554_v45 = vrot.slane %v553_v12, 2  ;;  %v476_v27 = vrot.slane %v475_v26, 2 }
 0x135   :  { %v570_v4 = vsel %vm569_vm9, %v567_v57, %v568_v8  ;;  %v522_v22 = vrot.slane %v521_v14, 2  ;;  %324 = vst.msk [vmem:[#allocation7 + $0xc] sm:$0x1] %vm320_vm10, %v319_v20 }
 0x136   :  { %vm595_vm13 = vcmp.eq.s32.totalorder %v1090_v17, %v570_v4  ;;  %vm596_vm14 = vcmp.eq.s32.totalorder %v1097_v28, %v570_v4  ;;  %vm555_vm15 = vcmp.lt.s32.totalorder %v553_v12, %v554_v45  ;;  %v477_v3 = vadd.f32 %v476_v27, %v475_v26 }
 0x137   :  { %v619_v21 = vsel %vm595_vm13, %v1040_v0, 0.0  ;;  %v620_v29 = vsel %vm596_vm14, %v1045_v5, 0.0  ;;  %v671_v31 = vsel %vm595_vm13, -1.0, %v1221_v30  ;;  %v672_v34 = vsel %vm596_vm14, -1.0, %v1224_v11 }
 0x138   :  { %v634_v7 = vsel %vm84_vm0, %v619_v21, 0.0  ;;  %v635_v35 = vsel %vm84_vm0, %v620_v29, 0.0  ;;  %v684_v36 = vmax.f32 %v671_v31, %v672_v34  ;;  %v556_v38 = vsel %vm555_vm15, %v553_v12, %v554_v45 }
 0x139   :  { %v636_v24 = vadd.f32 %v635_v35, %v634_v7  ;;  %v557_v25 = vrot.slane %v556_v38, 1  ;;  %v478_v39 = vrot.slane %v477_v3, 1  ;;  %v523_v40 = vmax.f32 %v521_v14, %v522_v22 }
 0x13a   :  { %v685_v32 = vrot.slane %v684_v36, 4  ;;  %v375_v0 = vsel %vm367_vm11, %v1090_v17, 16  ;;  %v376_v5 = vsel %vm368_vm12, %v1097_v28, 16 }
 0x13b   :  { %v637_v30 = vrot.slane %v636_v24, 4  ;;  %vm558_vm1 = vcmp.lt.s32.totalorder %v556_v38, %v557_v25  ;;  %v479_v11 = vadd.f32 %v478_v39, %v477_v3  ;;  %v524_v43 = vrot.slane %v523_v40, 1 }
 0x13c   :  { %v686_v42 = vmax.f32 %v684_v36, %v685_v32  ;;  %v559_v60 = vsel %vm558_vm1, %v556_v38, %v557_v25  ;;  %vm410_vm2 = vcmp.lt.s32.totalorder %v375_v0, %v376_v5 }
 0x13d   :  { %v638_v16 = vadd.f32 %v637_v30, %v636_v24  ;;  %vm593_vm3 = vcmp.eq.s32.totalorder %v1090_v17, %v559_v60  ;;  %vm594_vm4 = vcmp.eq.s32.totalorder %v1097_v28, %v559_v60  ;;  %v491_v46 = vmul.f32 %v479_v11, %v1202_v9 }
 0x13e   :  { %v687_v47 = vrot.slane %v686_v42, 2  ;;  %v617_v63 = vsel %vm593_vm3, %v1042_v2, 0.0  ;;  %v618_v49 = vsel %vm594_vm4, %v1047_v6, 0.0  ;;  %v669_v13 = vsel %vm593_vm3, -1.0, %v1238_v41 }
 0x13f   :  { %v639_v62 = vrot.slane %v638_v16, 2  ;;  %v625_v10 = vsel %vm84_vm0, %v617_v63, 0.0  ;;  %v626_v15 = vsel %vm84_vm0, %v618_v49, 0.0  ;;  %v670_v58 = vsel %vm594_vm4, -1.0, %v1243_v19  ;;  %495 = vst.msk [vmem:[#allocation7 + $0x9] sm:$0x1] %vm320_vm10, %v491_v46 }
 0x140   :  { %v688_v52 = vmax.f32 %v686_v42, %v687_v47  ;;  %v627_v37 = vadd.f32 %v626_v15, %v625_v10  ;;  %v677_v53 = vmax.f32 %v669_v13, %v670_v58  ;;  %v1333_v9 = vmax.f32 %v523_v40, %v524_v43  ;;  %v1363_v10 = vld [vmem:[#allocation2 + $0x20] sm:$0xff] }
 0x141   :  { %v640_v33 = vadd.f32 %v639_v62, %v638_v16  ;;  %v411_v2 = vsel %vm410_vm2, %v375_v0, %v376_v5 }
 0x142   :  { %v689_v6 = vrot.slane %v688_v52, 1  ;;  %v628_v54 = vrot.slane %v627_v37, 4  ;;  %v678_v41 = vrot.slane %v677_v53, 4  ;;  %vm537_vm5 = vcmp.ge.f32.partialorder %v1281_v48, %v1333_v9 }
 0x143   :  { %v641_v56 = vrot.slane %v640_v33, 1  ;;  %vm538_vm6 = vcmp.ge.f32.partialorder %v1295_v51, %v1333_v9  ;;  %v545_v19 = vsel %vm537_vm5, %v1090_v17, 16  ;;  %v412_v57 = vrot.slane %v411_v2, 4 }
 0x144   :  { %v1341_v59 = vmax.f32 %v688_v52, %v689_v6  ;;  %v629_v61 = vadd.f32 %v628_v54, %v627_v37  ;;  %v679_v1 = vmax.f32 %v677_v53, %v678_v41  ;;  %v546_v8 = vsel %vm538_vm6, %v1097_v28, 16  ;;  %v914_v37 = vld [vmem:[#allocation2 + $0x18] sm:$0xff] }
 0x145   :  { %v642_v26 = vadd.f32 %v641_v56, %v640_v33  ;;  %vm571_vm7 = vcmp.lt.s32.totalorder %v545_v19, %v546_v8  ;;  %vm413_vm8 = vcmp.lt.s32.totalorder %v411_v2, %v412_v57  ;;  %v1368_v33 = vld [vmem:[#allocation2 + $0x28] sm:$0xff] }
 0x146   :  { %vm707_vm9 = vcmp.ge.f32.partialorder %v671_v31, %v1341_v59  ;;  %vm708_vm11 = vcmp.ge.f32.partialorder %v672_v34, %v1341_v59  ;;  %v630_v12 = vrot.slane %v629_v61, 2  ;;  %v680_v14 = vrot.slane %v679_v1, 2 }
 0x147   :  { %v662_v20 = vmul.f32 %v642_v26, %v1261_v23  ;;  %v715_v45 = vsel %vm707_vm9, %v1090_v17, 16  ;;  %v716_v27 = vsel %vm708_vm11, %v1097_v28, 16  ;;  %v572_v4 = vsel %vm571_vm7, %v545_v19, %v546_v8 }
 0x148   :  { %vm732_vm12 = vcmp.lt.s32.totalorder %v715_v45, %v716_v27  ;;  %v631_v22 = vadd.f32 %v630_v12, %v629_v61  ;;  %v681_v3 = vmax.f32 %v679_v1, %v680_v14  ;;  %v573_v21 = vrot.slane %v572_v4, 4  ;;  %v1388_v12 = vld [vmem:[#allocation2 + $0x30] sm:$0xff] }
 0x149   :  { %666 = vst.msk [vmem:[#allocation7 + $0x6] sm:$0x1] %vm320_vm10, %v662_v20  ;;  %v733_v29 = vsel %vm732_vm12, %v715_v45, %v716_v27  ;;  %v414_v7 = vsel %vm413_vm8, %v411_v2, %v412_v57  ;;  %v1395_v27 = vld [vmem:[#allocation2 + $0x38] sm:$0xff] }
 0x14a   :  { %v734_v31 = vrot.slane %v733_v29, 4  ;;  %v632_v35 = vrot.slane %v631_v22, 1  ;;  %v682_v34 = vrot.slane %v681_v3, 1  ;;  %vm574_vm13 = vcmp.lt.s32.totalorder %v572_v4, %v573_v21 }
 0x14b   :  { %v575_v36 = vsel %vm574_vm13, %v572_v4, %v573_v21  ;;  %v415_v38 = vrot.slane %v414_v7, 2 }
 0x14c   :  { %vm735_vm14 = vcmp.lt.s32.totalorder %v733_v29, %v734_v31  ;;  %v633_v23 = vadd.f32 %v632_v35, %v631_v22  ;;  %v1350_v24 = vmax.f32 %v681_v3, %v682_v34  ;;  %v576_v25 = vrot.slane %v575_v36, 2 }
 0x14d   :  { %v736_v39 = vsel %vm735_vm14, %v733_v29, %v734_v31  ;;  %vm416_vm15 = vcmp.lt.s32.totalorder %v414_v7, %v415_v38 }
 0x14e   :  { %v737_v40 = vrot.slane %v736_v39, 2  ;;  %v661_v32 = vmul.f32 %v633_v23, %v1271_v44  ;;  %vm705_vm1 = vcmp.ge.f32.partialorder %v669_v13, %v1350_v24  ;;  %vm706_vm2 = vcmp.ge.f32.partialorder %v670_v58, %v1350_v24  ;;  %v913_v58 = vld [vmem:[#allocation2 + $0x10] sm:$0xff] }
 0x14f   :  { %v713_v0 = vsel %vm705_vm1, %v1090_v17, 16  ;;  %v714_v5 = vsel %vm706_vm2, %v1097_v28, 16  ;;  %vm577_vm3 = vcmp.lt.s32.totalorder %v575_v36, %v576_v25  ;;  %v417_v30 = vsel %vm416_vm15, %v414_v7, %v415_v38  ;;  %v918_v38 = vld [vmem:[#allocation2] sm:$0xff] }
 0x150   :  { %vm738_vm4 = vcmp.lt.s32.totalorder %v736_v39, %v737_v40  ;;  %665 = vst.msk [vmem:[#allocation7 + $0x2] sm:$0x1] %vm320_vm10, %v661_v32  ;;  %vm721_vm5 = vcmp.lt.s32.totalorder %v713_v0, %v714_v5  ;;  %v578_v11 = vsel %vm577_vm3, %v575_v36, %v576_v25  ;;  %v418_v42 = vrot.slane %v417_v30, 1  ;;  %v919_v25 = vld [vmem:[#allocation2 + $0x8] sm:$0xff] }
 0x151   :  { %v739_v60 = vsel %vm738_vm4, %v736_v39, %v737_v40  ;;  %v722_v43 = vsel %vm721_vm5, %v713_v0, %v714_v5  ;;  %v579_v16 = vrot.slane %v578_v11, 1 }
 0x152   :  { %v740_v44 = vrot.slane %v739_v60, 1  ;;  %v723_v46 = vrot.slane %v722_v43, 4  ;;  %vm419_vm6 = vcmp.lt.s32.totalorder %v417_v30, %v418_v42 }
 0x153   :  { %vm580_vm7 = vcmp.lt.s32.totalorder %v578_v11, %v579_v16  ;;  %v420_v47 = vsel %vm419_vm6, %v417_v30, %v418_v42 }
 0x154   :  { %vm741_vm8 = vcmp.lt.s32.totalorder %v739_v60, %v740_v44  ;;  %vm724_vm9 = vcmp.lt.s32.totalorder %v722_v43, %v723_v46  ;;  %v581_v63 = vsel %vm580_vm7, %v578_v11, %v579_v16  ;;  %vm427_vm11 = vcmp.eq.s32.totalorder %v1090_v17, %v420_v47 }
 0x155   :  { %v742_v49 = vsel %vm741_vm8, %v739_v60, %v740_v44  ;;  %v725_v13 = vsel %vm724_vm9, %v722_v43, %v723_v46  ;;  %vm597_vm12 = vcmp.eq.s32.totalorder %v1090_v17, %v581_v63  ;;  %vm598_vm13 = vcmp.eq.s32.totalorder %v1097_v28, %v581_v63 }
 0x156   :  { %vm767_vm14 = vcmp.eq.s32.totalorder %v1090_v17, %v742_v49  ;;  %vm768_vm15 = vcmp.eq.s32.totalorder %v1097_v28, %v742_v49  ;;  %v726_v62 = vrot.slane %v725_v13, 2  ;;  %v621_v15 = vsel %vm597_vm12, %v1363_v10, 0.0 }
 0x157   :  { %v791_v52 = vsel %vm767_vm14, %v913_v58, 0.0  ;;  %v792_v53 = vsel %vm768_vm15, %v914_v37, 0.0  ;;  %v622_v2 = vsel %vm598_vm13, %v1368_v33, 0.0  ;;  %v643_v6 = vsel %vm84_vm0, %v621_v15, 0.0 }
 0x158   :  { %v806_v54 = vsel %vm84_vm0, %v791_v52, 0.0  ;;  %v807_v41 = vsel %vm84_vm0, %v792_v53, 0.0  ;;  %vm727_vm1 = vcmp.lt.s32.totalorder %v725_v13, %v726_v62  ;;  %v644_v56 = vsel %vm84_vm0, %v622_v2, 0.0 }
 0x159   :  { %v808_v19 = vadd.f32 %v807_v41, %v806_v54  ;;  %v728_v57 = vsel %vm727_vm1, %v725_v13, %v726_v62  ;;  %v645_v61 = vadd.f32 %v644_v56, %v643_v6  ;;  %v1380_v1 = vsel %vm597_vm12, -1.0, %v1281_v48 }
 0x15a   :  { %v729_v8 = vrot.slane %v728_v57, 1  ;;  %v1385_v26 = vsel %vm598_vm13, -1.0, %v1295_v51  ;;  %vm428_vm2 = vcmp.eq.s32.totalorder %v1097_v28, %v420_v47  ;;  %v451_v14 = vsel %vm427_vm11, %v1388_v12, 0.0 }
 0x15b   :  { %v809_v20 = vrot.slane %v808_v19, 4  ;;  %v646_v45 = vrot.slane %v645_v61, 4  ;;  %v691_v48 = vmax.f32 %v1380_v1, %v1385_v26  ;;  %v452_v51 = vsel %vm428_vm2, %v1395_v27, 0.0 }
 0x15c   :  { %vm730_vm3 = vcmp.lt.s32.totalorder %v728_v57, %v729_v8  ;;  %v480_v4 = vsel %vm84_vm0, %v451_v14, 0.0  ;;  %v481_v22 = vsel %vm84_vm0, %v452_v51, 0.0  ;;  %v1405_v3 = vsel %vm427_vm11, -1.0, %v1252_v50 }
 0x15d   :  { %v810_v21 = vadd.f32 %v809_v20, %v808_v19  ;;  %v731_v29 = vsel %vm730_vm3, %v728_v57, %v729_v8  ;;  %v647_v7 = vadd.f32 %v646_v45, %v645_v61  ;;  %v692_v31 = vrot.slane %v691_v48, 4 }
 0x15e   :  { %vm765_vm4 = vcmp.eq.s32.totalorder %v1090_v17, %v731_v29  ;;  %vm766_vm5 = vcmp.eq.s32.totalorder %v1097_v28, %v731_v29  ;;  %v482_v35 = vadd.f32 %v481_v22, %v480_v4  ;;  %v1412_v34 = vsel %vm428_vm2, -1.0, %v1257_v55 }
 0x15f   :  { %v811_v36 = vrot.slane %v810_v21, 2  ;;  %v789_v23 = vsel %vm765_vm4, %v918_v38, 0.0  ;;  %v790_v50 = vsel %vm766_vm5, %v919_v25, 0.0  ;;  %v648_v39 = vrot.slane %v647_v7, 2 }
 0x160   :  { %v797_v40 = vsel %vm84_vm0, %v789_v23, 0.0  ;;  %v798_v32 = vsel %vm84_vm0, %v790_v50, 0.0  ;;  %v693_v0 = vmax.f32 %v691_v48, %v692_v31  ;;  %v483_v5 = vrot.slane %v482_v35, 4 }
 0x161   :  { %v812_v30 = vadd.f32 %v811_v36, %v810_v21  ;;  %v799_v11 = vadd.f32 %v798_v32, %v797_v40  ;;  %v649_v42 = vadd.f32 %v648_v39, %v647_v7  ;;  %v526_v60 = vmax.f32 %v1405_v3, %v1412_v34 }
 0x162   :  { %v694_v55 = vrot.slane %v693_v0, 2  ;;  %v484_v43 = vadd.f32 %v483_v5, %v482_v35 }
 0x163   :  { %v813_v16 = vrot.slane %v812_v30, 1  ;;  %v800_v44 = vrot.slane %v799_v11, 4  ;;  %v650_v46 = vrot.slane %v649_v42, 1  ;;  %v527_v47 = vrot.slane %v526_v60, 4 }
 0x164   :  { %v695_v63 = vmax.f32 %v693_v0, %v694_v55  ;;  %v485_v49 = vrot.slane %v484_v43, 2 }
 0x165   :  { %v814_v13 = vadd.f32 %v813_v16, %v812_v30  ;;  %v801_v62 = vadd.f32 %v800_v44, %v799_v11  ;;  %v651_v15 = vadd.f32 %v650_v46, %v649_v42  ;;  %v528_v58 = vmax.f32 %v526_v60, %v527_v47 }
 0x166   :  { %v696_v52 = vrot.slane %v695_v63, 1  ;;  %v486_v37 = vadd.f32 %v485_v49, %v484_v43 }
 0x167   :  { %v834_v53 = vmul.f32 %v814_v13, %v1341_v59  ;;  %v802_v2 = vrot.slane %v801_v62, 2  ;;  %v663_v6 = vmul.f32 %v651_v15, %v1333_v9  ;;  %v529_v54 = vrot.slane %v528_v58, 2 }
 0x168   :  { %v1420_v41 = vmax.f32 %v695_v63, %v696_v52  ;;  %v487_v56 = vrot.slane %v486_v37, 1 }
 0x169   :  { %838 = vst.msk [vmem:[#allocation7 + $0x7] sm:$0x1] %vm320_vm10, %v834_v53  ;;  %v803_v19 = vadd.f32 %v802_v2, %v801_v62  ;;  %667 = vst.msk [vmem:[#allocation7 + $0xa] sm:$0x1] %vm320_vm10, %v663_v6  ;;  %v530_v57 = vmax.f32 %v528_v58, %v529_v54 }
 0x16a   :  { %vm709_vm6 = vcmp.ge.f32.partialorder %v1380_v1, %v1420_v41  ;;  %vm710_vm7 = vcmp.ge.f32.partialorder %v1385_v26, %v1420_v41  ;;  %v488_v59 = vadd.f32 %v487_v56, %v486_v37 }
 0x16b   :  { %v804_v61 = vrot.slane %v803_v19, 1  ;;  %v717_v9 = vsel %vm709_vm6, %v1090_v17, 16  ;;  %v718_v8 = vsel %vm710_vm7, %v1097_v28, 16  ;;  %v531_v14 = vrot.slane %v530_v57, 1 }
 0x16c   :  { %vm743_vm8 = vcmp.lt.s32.totalorder %v717_v9, %v718_v8  ;;  %v492_v20 = vmul.f32 %v488_v59, %v1300_v18 }
 0x16d   :  { %v805_v45 = vadd.f32 %v804_v61, %v803_v19  ;;  %v744_v48 = vsel %vm743_vm8, %v717_v9, %v718_v8  ;;  %v1431_v51 = vmax.f32 %v530_v57, %v531_v14 }
 0x16e   :  { %v745_v4 = vrot.slane %v744_v48, 4  ;;  %496 = vst.msk [vmem:[#allocation7 + $0xd] sm:$0x1] %vm320_vm10, %v492_v20 }
 0x16f   :  { %v833_v1 = vmul.f32 %v805_v45, %v1350_v24  ;;  %vm539_vm9 = vcmp.ge.f32.partialorder %v1405_v3, %v1431_v51  ;;  %vm540_vm11 = vcmp.ge.f32.partialorder %v1412_v34, %v1431_v51 }
 0x170   :  { %vm746_vm12 = vcmp.lt.s32.totalorder %v744_v48, %v745_v4  ;;  %v547_v26 = vsel %vm539_vm9, %v1090_v17, 16  ;;  %v548_v18 = vsel %vm540_vm11, %v1097_v28, 16 }
 0x171   :  { %837 = vst.msk [vmem:[#allocation7 + $0x3] sm:$0x1] %vm320_vm10, %v833_v1  ;;  %v747_v22 = vsel %vm746_vm12, %v744_v48, %v745_v4  ;;  %vm582_vm13 = vcmp.lt.s32.totalorder %v547_v26, %v548_v18 }
 0x172   :  { %v748_v21 = vrot.slane %v747_v22, 2  ;;  %v583_v29 = vsel %vm582_vm13, %v547_v26, %v548_v18 }
 0x173   :  { %v584_v7 = vrot.slane %v583_v29, 4 }
 0x174   :  { %vm749_vm14 = vcmp.lt.s32.totalorder %v747_v22, %v748_v21 }
 0x175   :  { %v750_v24 = vsel %vm749_vm14, %v747_v22, %v748_v21  ;;  %vm585_vm15 = vcmp.lt.s32.totalorder %v583_v29, %v584_v7 }
 0x176   :  { %v751_v31 = vrot.slane %v750_v24, 1  ;;  %v586_v35 = vsel %vm585_vm15, %v583_v29, %v584_v7 }
 0x177   :  { %v587_v36 = vrot.slane %v586_v35, 2 }
 0x178   :  { %vm752_vm1 = vcmp.lt.s32.totalorder %v750_v24, %v751_v31 }
 0x179   :  { %v753_v38 = vsel %vm752_vm1, %v750_v24, %v751_v31  ;;  %vm588_vm2 = vcmp.lt.s32.totalorder %v586_v35, %v587_v36 }
 0x17a   :  { %vm769_vm3 = vcmp.eq.s32.totalorder %v1090_v17, %v753_v38  ;;  %vm770_vm4 = vcmp.eq.s32.totalorder %v1097_v28, %v753_v38  ;;  %v589_v23 = vsel %vm588_vm2, %v586_v35, %v587_v36 }
 0x17b   :  { %v793_v25 = vsel %vm769_vm3, %v1363_v10, 0.0  ;;  %v794_v50 = vsel %vm770_vm4, %v1368_v33, 0.0  ;;  %v590_v39 = vrot.slane %v589_v23, 1 }
 0x17c   :  { %v815_v40 = vsel %vm84_vm0, %v793_v25, 0.0  ;;  %v816_v32 = vsel %vm84_vm0, %v794_v50, 0.0 }
 0x17d   :  { %v817_v0 = vadd.f32 %v816_v32, %v815_v40  ;;  %vm591_vm5 = vcmp.lt.s32.totalorder %v589_v23, %v590_v39 }
 0x17e   :  { %v592_v5 = vsel %vm591_vm5, %v589_v23, %v590_v39 }
 0x17f   :  { %v818_v30 = vrot.slane %v817_v0, 4  ;;  %vm599_vm6 = vcmp.eq.s32.totalorder %v1090_v17, %v592_v5  ;;  %vm600_vm7 = vcmp.eq.s32.totalorder %v1097_v28, %v592_v5 }
 0x180   :  { %v623_v11 = vsel %vm599_vm6, %v1388_v12, 0.0  ;;  %v624_v42 = vsel %vm600_vm7, %v1395_v27, 0.0  ;;  %v675_v10 = vsel %vm599_vm6, -1.0, %v1405_v3  ;;  %v676_v33 = vsel %vm600_vm7, -1.0, %v1412_v34 }
 0x181   :  { %v819_v60 = vadd.f32 %v818_v30, %v817_v0  ;;  %v652_v55 = vsel %vm84_vm0, %v623_v11, 0.0  ;;  %v653_v43 = vsel %vm84_vm0, %v624_v42, 0.0  ;;  %v698_v16 = vmax.f32 %v675_v10, %v676_v33 }
 0x182   :  { %v654_v44 = vadd.f32 %v653_v43, %v652_v55 }
 0x183   :  { %v820_v46 = vrot.slane %v819_v60, 2  ;;  %v699_v47 = vrot.slane %v698_v16, 4 }
 0x184   :  { %v655_v63 = vrot.slane %v654_v44, 4 }
 0x185   :  { %v821_v49 = vadd.f32 %v820_v46, %v819_v60  ;;  %v700_v13 = vmax.f32 %v698_v16, %v699_v47 }
 0x186   :  { %v656_v62 = vadd.f32 %v655_v63, %v654_v44 }
 0x187   :  { %v822_v15 = vrot.slane %v821_v49, 1  ;;  %v701_v58 = vrot.slane %v700_v13, 2 }
 0x188   :  { %v657_v52 = vrot.slane %v656_v62, 2 }
 0x189   :  { %v823_v37 = vadd.f32 %v822_v15, %v821_v49  ;;  %v702_v3 = vmax.f32 %v700_v13, %v701_v58 }
 0x18a   :  { %v658_v53 = vadd.f32 %v657_v52, %v656_v62 }
 0x18b   :  { %v835_v34 = vmul.f32 %v823_v37, %v1420_v41  ;;  %v703_v2 = vrot.slane %v702_v3, 1 }
 0x18c   :  { %v659_v6 = vrot.slane %v658_v53, 1 }
 0x18d   :  { %839 = vst.msk [vmem:[#allocation7 + $0xb] sm:$0x1] %vm320_vm10, %v835_v34  ;;  %v704_v54 = vmax.f32 %v702_v3, %v703_v2 }
 0x18e   :  { %v660_v56 = vadd.f32 %v659_v6, %v658_v53 }
 0x18f   :  { %vm711_vm8 = vcmp.ge.f32.partialorder %v675_v10, %v704_v54  ;;  %vm712_vm9 = vcmp.ge.f32.partialorder %v676_v33, %v704_v54 }
 0x190   :  { %v664_v19 = vmul.f32 %v660_v56, %v1431_v51  ;;  %v719_v57 = vsel %vm711_vm8, %v1090_v17, 16  ;;  %v720_v59 = vsel %vm712_vm9, %v1097_v28, 16 }
 0x191   :  { %vm754_vm11 = vcmp.lt.s32.totalorder %v719_v57, %v720_v59 }
 0x192   :  { %668 = vst.msk [vmem:[#allocation7 + $0xe] sm:$0x1] %vm320_vm10, %v664_v19  ;;  %v755_v61 = vsel %vm754_vm11, %v719_v57, %v720_v59 }
 0x193   :  { %v756_v9 = vrot.slane %v755_v61, 4 }
 0x195   :  { %vm757_vm12 = vcmp.lt.s32.totalorder %v755_v61, %v756_v9 }
 0x196   :  { %v758_v41 = vsel %vm757_vm12, %v755_v61, %v756_v9 }
 0x197   :  { %v759_v8 = vrot.slane %v758_v41, 2 }
 0x199   :  { %vm760_vm13 = vcmp.lt.s32.totalorder %v758_v41, %v759_v8 }
 0x19a   :  { %v761_v14 = vsel %vm760_vm13, %v758_v41, %v759_v8 }
 0x19b   :  { %v762_v20 = vrot.slane %v761_v14, 1 }
 0x19d   :  { %vm763_vm14 = vcmp.lt.s32.totalorder %v761_v14, %v762_v20 }
 0x19e   :  { %v764_v45 = vsel %vm763_vm14, %v761_v14, %v762_v20 }
 0x19f   :  { %vm771_vm15 = vcmp.eq.s32.totalorder %v1090_v17, %v764_v45  ;;  %vm772_vm1 = vcmp.eq.s32.totalorder %v1097_v28, %v764_v45 }
 0x1a0   :  { %v795_v48 = vsel %vm771_vm15, %v1388_v12, 0.0  ;;  %v796_v51 = vsel %vm772_vm1, %v1395_v27, 0.0 }
 0x1a1   :  { %v824_v4 = vsel %vm84_vm0, %v795_v48, 0.0  ;;  %v825_v1 = vsel %vm84_vm0, %v796_v51, 0.0 }
 0x1a2   :  { %v826_v26 = vadd.f32 %v825_v1, %v824_v4 }
 0x1a4   :  { %v827_v18 = vrot.slane %v826_v26, 4 }
 0x1a6   :  { %v828_v22 = vadd.f32 %v827_v18, %v826_v26 }
 0x1a8   :  { %v829_v21 = vrot.slane %v828_v22, 2 }
 0x1aa   :  { %v830_v29 = vadd.f32 %v829_v21, %v828_v22 }
 0x1ac   :  { %v831_v7 = vrot.slane %v830_v29, 1 }
 0x1ae   :  { %v832_v24 = vadd.f32 %v831_v7, %v830_v29 }
 0x1b0   :  { %v836_v17 = vmul.f32 %v832_v24, %v704_v54 }
 0x1b2   :  { %840 = vst.msk [vmem:[#allocation7 + $0xf] sm:$0x1] %vm320_vm10, %v836_v17 }
 0x1b3   :  { %975 = shalt.err (!%p972_p6)
}
 0x1b4   :  { %s976_s12 = scalar_lea.hbm %s1483_s2, 256 }
 0x1b5   :  { %p977_p7 = scmp.ne.s32.totalorder %s1483_s2, %s976_s12  ;;  %p980_p8 = scmp.lt.u32.totalorder %s976_s12, %s1483_s2 }
 0x1b7   :  { %p982_p9 = pnand %p980_p8, %p977_p7 }
 0x1b9   :  { %985 = shalt.err (!%p982_p9)
}
 0x1ba   :  { %s999_s17 = smov 64   ;;  %s1000_s18 = smov 4  }
 0x1bb   :  { %852 = dma.vmem_to_hbm [thread:$0]  %s847_s8, 256, %s1483_s2, [#allocation4], %s999_s17, %s999_s17, %s1000_s18  }
 0x1bc   :  { %990 = dma.done.wait [#allocation4], 256  }
 0x1bd   :  { %991 = vsyncadd [#allocation4], 4294967040 }
 0x1be   :  { %856 = vsyncpa [#allocation3], 1 }
 0x1bf   :  { %857 = vsyncpa [#allocation6], 1 }
 0x1c0   :  { %858 = vsyncpa [#allocation4], 1 }

</bundles_post_ra>
